<compile_context>
chip_gen: v7x
topology: tpu7x:2x2x1
jax: 0.10.0
libtpu: 0.0.40
codegen_flags: <defaults>
</compile_context>

<pallas_src>
import jax
import jax.numpy as jnp
from jax.experimental import pallas as pl
from jax.experimental.pallas import tpu as pltpu


def _round_up(x, m):
    return (x + m - 1) // m * m


def _vmem_budget():
    """(double-buffer tile budget, scoped vmem_limit_bytes) derived from TpuInfo."""
    try:
        info = pltpu.get_tpu_info()
        vmem = int(getattr(info, "vmem_capacity_bytes", 0)) or (64 << 20)
    except Exception:
        vmem = 64 << 20                      # conservative (v7x physical VMEM)
    budget = min(max(vmem // 4, 8 << 20), 24 << 20)   # diminishing returns > ~16-24 MiB
    limit = int(min(vmem, budget + (8 << 20)))        # headroom for kernel internals
    return budget, limit


def _pick_batch_tile(B, in_cols, out_cols, dtype, budget):
    """Batch tile: dtype-aware sublane rounding, >=4 grid steps when possible,
    double-buffered in+out tiles under `budget` bytes."""
    itemsize = jnp.dtype(dtype).itemsize
    sub = {4: 8, 2: 16, 1: 32}.get(itemsize, 8)       # sublane tile per dtype
    if B <= sub:
        return B                                      # block == full dim is allowed
    lane = 128
    per_row = 2 * (_round_up(in_cols, lane) + _round_up(out_cols, lane)) * itemsize
    cap = max(sub, (budget // per_row) // sub * sub)
    if B >= 4 * sub:
        tb = max(sub, (B // 4) // sub * sub)          # aim for >= 4 grid steps
    else:
        tb = sub                                      # still gives >= 2 steps
    return min(tb, cap)


def _make_kernel(P, S, L):
    PL = P * L
    inv_L = 1.0 / float(L)

    if S == 0:
        def copy_kernel(x_ref, o_ref):
            # Pure streaming copy; Mosaic pipelines vld -> vst per vreg.
            o_ref[...] = x_ref[...]
        return copy_kernel

    def kernel(x_ref, m_ref, o_ref):
        if PL > 0:
            # Profile channels: one wide contiguous lane copy, sliced on the
            # refs (no full-tile load into vregs, no spills).
            o_ref[:, :PL] = x_ref[:, :PL]
        # Scalar means: a single MXU matmul against the constant block-diagonal
        # ones matrix does the width-L reduction AND the lane placement of the
        # (tb, S) result in one op stream; accumulate in f32, scale by 1/L.
        sums = jnp.dot(x_ref[:, PL:], m_ref[...],
                       preferred_element_type=jnp.float32)      # (tb, S) f32
        o_ref[:, PL:] = (sums * inv_L).astype(o_ref.dtype)

    return kernel


def function_to_data_mean(x, target_profile_num, target_scalar_num, *, batch_tile=None):
    """x: (B, P+S, L) -> (B, P*L + S)   (matches FunctionToDataMean.forward)."""
    B, C, L = x.shape
    P, S = target_profile_num, target_scalar_num
    assert C == P + S, f"channel dim {C} != P+S = {P + S}"
    PL = P * L
    out_dim = PL + S
    in_cols = C * L

    # Lane-dense layout: contiguous (B, C, L) -> (B, C*L); no data movement.
    x_flat = x.reshape(B, in_cols)
    itemsize = jnp.dtype(x.dtype).itemsize

    budget, vmem_limit = _vmem_budget()
    tb = batch_tile if batch_tile is not None else _pick_batch_tile(
        B, in_cols, out_dim, x.dtype, budget)
    grid = (pl.cdiv(B, tb),)

    kernel = _make_kernel(P, S, L)

    cost = pl.CostEstimate(
        flops=2 * B * S * L,                               # the segment means
        transcendentals=0,
        bytes_accessed=B * in_cols * itemsize + B * out_dim * itemsize,
    )

    in_specs = [pl.BlockSpec((tb, in_cols), lambda i: (i, 0))]
    operands = [x_flat]
    if S > 0:
        # Constant block-diagonal "ones" matrix: column s has ones on rows
        # s*L .. (s+1)*L-1, so x_scalar @ M = per-channel sums over levels.
        sum_mat = jnp.repeat(jnp.eye(S, dtype=x.dtype), L, axis=0)   # (S*L, S)
        in_specs.append(pl.BlockSpec((S * L, S), lambda i: (0, 0)))
        operands.append(sum_mat)

    return pl.pallas_call(
        kernel,
        out_shape=jax.ShapeDtypeStruct((B, out_dim), x.dtype),
        grid=grid,
        in_specs=in_specs,
        out_specs=pl.BlockSpec((tb, out_dim), lambda i: (i, 0)),
        compiler_params=pltpu.CompilerParams(
            dimension_semantics=("parallel",),
            vmem_limit_bytes=vmem_limit),
        cost_estimate=cost,
    )(*operands)


def reference(x, P, S):
    B, C, L = x.shape
    x_profile = x[:, :P, :].reshape(B, P * L)
    x_scalar_mean = jnp.mean(x[:, P:, :].astype(jnp.float32), axis=2).astype(x.dtype)
    return jnp.concatenate([x_profile, x_scalar_mean], axis=1)


if __name__ == "__main__":
    key = jax.random.PRNGKey(0)

    # Small shapes consistent with the module: B=2, P=4 profiles, S=3 scalars,
    # L=16 vertical levels -> x: (2, 7, 16), out: (2, 4*16 + 3) = (2, 67).
    B, P, S, L = 2, 4, 3, 16
    x = jax.random.normal(key, (B, P + S, L), dtype=jnp.float32)
    out = jax.block_until_ready(function_to_data_mean(x, P, S))
    ref = reference(x, P, S)
    assert out.shape == (B, P * L + S), out.shape
    assert jnp.allclose(out, ref, atol=1e-5, rtol=1e-5), "mismatch vs reference"

    # Explicit batch tile: 3 pipelined grid steps of 8 rows.
    B2 = 24
    x2 = jax.random.normal(jax.random.PRNGKey(0), (B2, P + S, L), dtype=jnp.float32)
    out2 = jax.block_until_ready(function_to_data_mean(x2, P, S, batch_tile=8))
    assert out2.shape == (B2, P * L + S), out2.shape
    assert jnp.allclose(out2, reference(x2, P, S), atol=1e-5, rtol=1e-5), \
        "mismatch vs reference (tiled)"

    # Auto-picked tile: >= 4 grid steps (pipelining / v7x two-TC split).
    B3 = 32
    x3 = jax.random.normal(jax.random.PRNGKey(1), (B3, P + S, L), dtype=jnp.float32)
    out3 = jax.block_until_ready(function_to_data_mean(x3, P, S))
    assert out3.shape == (B3, P * L + S), out3.shape
    assert jnp.allclose(out3, reference(x3, P, S), atol=1e-5, rtol=1e-5), \
        "mismatch vs reference (auto tile)"

    print("KERNEL_OK")
</pallas_src>

<mosaic_0001>
module attributes {stable_mosaic.version = 11 : i64} {
  func.func @kernel(%arg0: i32, %arg1: memref<2x112xf32, #tpu.memory_space<vmem>>, %arg2: memref<48x3xf32, #tpu.memory_space<vmem>>, %arg3: memref<2x67xf32, #tpu.memory_space<vmem>>) attributes {dimension_semantics = [#tpu.dimension_semantics<parallel>], iteration_bounds = array<i64: 1>, scalar_prefetch = 0 : i64, scratch_operands = 0 : i64, tpu.core_type = #tpu.core_type<tc>, window_params = [{transform_indices = @transform_0, window_bounds = array<i64: 2, 112>}, {pipeline_mode = #tpu.pipeline_mode<synchronous>, transform_indices = @transform_1, window_bounds = array<i64: 48, 3>}, {transform_indices = @transform_2, window_bounds = array<i64: 2, 67>}]} {
    %c0 = arith.constant 0 : index
    %c0_0 = arith.constant 0 : index
    %0 = vector.load %arg1[%c0, %c0_0] : memref<2x112xf32, #tpu.memory_space<vmem>>, vector<2x64xf32>
    %c0_1 = arith.constant 0 : index
    %c0_2 = arith.constant 0 : index
    %1 = vector.load %arg3[%c0_1, %c0_2] : memref<2x67xf32, #tpu.memory_space<vmem>>, vector<2x64xf32>
    tpu.vector_store %arg3[%c0_1, %c0_2], %0 {strides = array<i32>} : memref<2x67xf32, #tpu.memory_space<vmem>>, vector<2x64xf32>,
    %c0_3 = arith.constant 0 : index
    %c64 = arith.constant 64 : index
    %2 = vector.load %arg1[%c0_3, %c64] : memref<2x112xf32, #tpu.memory_space<vmem>>, vector<2x48xf32>
    %c0_4 = arith.constant 0 : index
    %c0_5 = arith.constant 0 : index
    %3 = vector.load %arg2[%c0_4, %c0_5] : memref<48x3xf32, #tpu.memory_space<vmem>>, vector<48x3xf32>
    %cst = arith.constant dense<0.000000e+00> : vector<2x3xf32>
    %4 = tpu.matmul %2, %3, %cst {dimension_numbers = #tpu.dot_dimension_numbers<[1], [0], [0], [1], [0, 0, 1, 1], [], []>} : vector<2x48xf32>, vector<48x3xf32>, vector<2x3xf32> -> vector<2x3xf32>
    %cst_6 = arith.constant 6.250000e-02 : f32
    %5 = vector.broadcast %cst_6 : f32 to vector<2x3xf32>
    %6 = arith.mulf %4, %5 : vector<2x3xf32>
    %c0_7 = arith.constant 0 : index
    %c64_8 = arith.constant 64 : index
    %7 = vector.load %arg3[%c0_7, %c64_8] : memref<2x67xf32, #tpu.memory_space<vmem>>, vector<2x3xf32>
    tpu.vector_store %arg3[%c0_7, %c64_8], %6 {strides = array<i32>} : memref<2x67xf32, #tpu.memory_space<vmem>>, vector<2x3xf32>,
    return
  }
  func.func @transform_0(%arg0: i32) -> (i32, i32) {
    %c0_i32 = arith.constant 0 : i32
    %c0_i32_0 = arith.constant 0 : i32
    return %arg0, %c0_i32 : i32, i32
  }
  func.func @transform_1(%arg0: i32) -> (i32, i32) {
    %c0_i32 = arith.constant 0 : i32
    %c0_i32_0 = arith.constant 0 : i32
    %c0_i32_1 = arith.constant 0 : i32
    return %c0_i32, %c0_i32_0 : i32, i32
  }
  func.func @transform_2(%arg0: i32) -> (i32, i32) {
    %c0_i32 = arith.constant 0 : i32
    %c0_i32_0 = arith.constant 0 : i32
    return %arg0, %c0_i32 : i32, i32
  }
}

</mosaic_0001>

<bundles_post_ra>
// kernel: tpu_custom_call.1
= control target key start
LH: loop header
LB: loop body
LE: loop exit
PB: predicated region body
PF: predicated region fallthrough
CT: control target
= control target key end

     0   :  { %s180_s15 = smov 64   ;;  %v181_v3 = vmov 0.0|0.0   ;;  %vm182_vm0 = vmmov 0   ;;  %v183_v7 = vmov 0.0   ;;  %s236_s0 = inlined_call_operand.vmem [shape: f32[2,112], index: 0, kind: input, shape index: {}]   ;;  %s237_s1 = inlined_call_operand.vmem [shape: f32[48,3], index: 1, kind: input, shape index: {}]   ;;  %s238_s2 = inlined_call_operand.hbm [shape: f32[2,67], index: 2, kind: output, shape index: {}]  }
   0x1   :  { %v15_v0 = vld [vmem:[%s236_s0] sm:$0x3]  ;;  %v17_v2 = vld [vmem:[%s237_s1 + $0x8] sm:$0xff]  ;;  %142 = vmatprep.subr.bf16.mxu0 %v181_v3  ;;  %v18_v5 = vld [vmem:[%s237_s1 + $0x10] sm:$0xff]  ;;  %139 = vmatprep.mubr.msk.f32.mxu0 %vm182_vm0, %v183_v7 }
   0x2   :  { %v16_v1 = vld [vmem:[%s237_s1] sm:$0xff]  ;;  %23 = vrot.lane.b32.xlu0 %v15_v0, %s180_s15  ;;  %v19_v6 = vld [vmem:[%s237_s1 + $0x18] sm:$0xff] }
   0x3   :  { %v143_v4 = vpack.c.bf16 %v17_v2, %v16_v1 }
   0x4   :  { %7 = vsyncpa [#allocation3], 0  ;;  %v146_v8 = vpack.c.bf16 %v19_v6, %v18_v5  ;;  %v20_v9 = vld [vmem:[%s237_s1 + $0x20] sm:$0xff]  ;;  %v21_v10 = vld [vmem:[%s237_s1 + $0x28] sm:$0xff]  ;;  %vm25_vm1 = vcmask 392192   ;;  %vm13_vm2 = vcmask 517120  }
   0x5   :  { %144 = vmatpush3.bf16.msra.mxu0 %v143_v4  ;;  %v149_v11 = vpack.c.bf16 %v21_v10, %v20_v9  ;;  %v12_v13 = vld [vmem:[%s236_s0] sm:$0x3]  ;;  %s184_s26 = smov [#allocation2]   ;;  %vm103_vm3 = vcmask 542208  }
   0x6   :  { %145 = vmatprep.subr.bf16.mxu0 %v181_v3  ;;  %14 = vst.msk [vmem:[#allocation2] sm:$0x3] %vm13_vm2, %v12_v13  ;;  %s111_s27 = sshll.u32 %s184_s26, 4  ;;  %s112_s27 = int_to_ptr.vmem [resolvable:$true] %s111_s27 }
   0x7   :  { %s156_s1 = scalar_lea.vmem %s112_s27, 32  ;;  %p161_p1 = scmp.lt.s32.totalorder %s112_s27, %s112_s27 }
   0x8   :  { %p157_p0 = scmp.ne.s32.totalorder %s112_s27, %s156_s1  ;;  %p162_p2 = scmp.lt.s32.totalorder %s156_s1, %s156_s1 }
   0x9   :  { %147 = vmatpush3.bf16.msra.mxu0 %v146_v8 }
   0xa   :  { %148 = vmatprep.subr.bf16.mxu0 %v181_v3  ;;  %p163_p3 = por %p162_p2, %p161_p1 }
   0xc   :  { %p164_p4 = pnand %p163_p3, %p157_p0 }
   0xd   :  { %150 = vmatpush3.bf16.msra.mxu0 %v149_v11 }
  0x74   :  { %v24_v12 = vpop.permute.xlu0 %23 }
  0x75   :  { %140 = vmatmul.mubr.msk.f32.vlgmr.msra.gmra.mrb[0].mxu0 %vm25_vm1, %v24_v12 }
 0x148   :  { %v94_v14 = vpop.f32.mrb[0].mxu0 }
 0x149   :  { %v98_v15 = vmul.f32 0.0625, %v94_v14  ;;  %v141_v16 = vpop.f32.mrb[1].mxu0 }
 0x14b   :  { %100 = vrot.lane.b32.xlu0 %v98_v15, %s180_s15 }
 0x1bd   :  { %v101_v17 = vpop.permute.xlu0 %100 }
 0x1be   :  { %104 = vst.msk [vmem:[#allocation2] sm:$0x3] %vm103_vm3, %v101_v17 }
 0x1bf   :  { %167 = shalt.err (!%p164_p4)
}
 0x1c0   :  { %s168_s29 = scalar_lea.hbm %s238_s2, 32 }
 0x1c1   :  { %p169_p5 = scmp.ne.s32.totalorder %s238_s2, %s168_s29  ;;  %p172_p6 = scmp.lt.u32.totalorder %s168_s29, %s238_s2 }
 0x1c3   :  { %p174_p7 = pnand %p172_p6, %p169_p5 }
 0x1c5   :  { %177 = shalt.err (!%p174_p7)
}
 0x1c6   :  { %114 = dma.vmem_to_hbm [thread:$0]  %s112_s27, 32, %s238_s2, [#allocation3]  }
 0x1c7   :  { %178 = dma.done.wait [#allocation3], 32  }
 0x1c8   :  { %179 = vsyncadd [#allocation3], 4294967264 }
 0x1c9   :  { %118 = vsyncpa [#allocation3], 1 }

</bundles_post_ra>
